<compile_context>
chip_gen: v5e
topology: v5e:2x2
jax: 0.10.0
libtpu: 0.0.40
codegen_flags: <defaults>
</compile_context>

<pallas_src>
import math

import jax
import jax.numpy as jnp
from jax.experimental import pallas as pl
from jax.experimental.pallas import tpu as pltpu


def _supact_kernel(gamma_ref, beta_ref, x_ref, o_ref):
    # gamma/beta: (1, LANE) f32 rows; x/o: (TM, LANE) tile.
    xf = x_ref[...].astype(jnp.float32)
    g = gamma_ref[...]                      # (1, LANE), broadcasts along sublanes
    b = beta_ref[...]
    # sigmoid(beta * x); 1/(1+exp(-z)) is f32-safe for both tails (inf -> 0, 0 -> 1).
    inv = 1.0 / (1.0 + jnp.exp(-(b * xf)))
    mult = g + inv * (1.0 - g)
    o_ref[...] = (mult * xf).astype(o_ref.dtype)


def _choose_lane(in_size, total):
    """Smallest multiple of lcm(in_size, 128) that divides the element count,
    preferring >= 512 lanes for dense unmasked stores. Falls back to in_size."""
    base = (in_size * 128) // math.gcd(in_size, 128)   # lcm(in_size, 128)
    best = None
    mult = 1
    while True:
        lane = base * mult
        if lane > 4096:
            break
        if total % lane == 0:
            best = lane
            if lane >= 512:
                break
        mult += 1
    return best if best is not None else in_size


def supact(x, gamma, beta, *, donate_x=False, block_rows=None):
    """Pallas TPU Supact. x: (..., in_size); gamma, beta: (in_size,)."""
    in_size = x.shape[-1]
    assert gamma.shape == (in_size,) and beta.shape == (in_size,)
    orig_shape = x.shape
    total = x.size

    lane = _choose_lane(in_size, total)
    k = lane // in_size
    rows = total // lane
    x2d = x.reshape(rows, lane)

    # Per-feature params tiled along the lane dim (tiny, done once outside).
    g_lane = jnp.tile(gamma.astype(jnp.float32), k).reshape(1, lane)
    b_lane = jnp.tile(beta.astype(jnp.float32), k).reshape(1, lane)

    # Row tile: ~1 MiB per buffer (double-buffered in + out ~= 4 MiB total),
    # sized for v7x's smaller VMEM; never smaller than 32 sublanes.
    if block_rows is not None:
        tm = max(8, (block_rows // 8) * 8)
    else:
        bytes_per_row = lane * x.dtype.itemsize
        tm = max(32, ((1 << 20) // bytes_per_row) // 32 * 32)
        tm = min(tm, 2048)
    if rows <= tm:
        tm = rows                        # single full-extent block (always legal)
    grid = (pl.cdiv(rows, tm),)

    extra = {}
    if donate_x:
        extra["input_output_aliases"] = {2: 0}   # alias x2d -> output buffer

    out2d = pl.pallas_call(
        _supact_kernel,
        out_shape=jax.ShapeDtypeStruct((rows, lane), x.dtype),
        grid=grid,
        in_specs=[
            pl.BlockSpec((1, lane), lambda i: (0, 0)),    # gamma lane-row (reused)
            pl.BlockSpec((1, lane), lambda i: (0, 0)),    # beta lane-row (reused)
            pl.BlockSpec((tm, lane), lambda i: (i, 0)),   # x tile
        ],
        out_specs=pl.BlockSpec((tm, lane), lambda i: (i, 0)),
        compiler_params=pltpu.CompilerParams(
            dimension_semantics=("parallel",),
        ),
        **extra,
    )(g_lane, b_lane, x2d)

    return out2d.reshape(orig_shape)


def _supact_ref(x, gamma, beta):
    xf = x.astype(jnp.float32)
    inv = jax.nn.sigmoid(beta * xf)
    mult = gamma + inv * (1.0 - gamma)
    return (mult * xf).astype(x.dtype)


if __name__ == "__main__":
    key = jax.random.PRNGKey(0)
    k1, k2, k3, k4 = jax.random.split(key, 4)

    in_size = 32
    batch = 16
    x = jax.random.normal(k1, (batch, in_size), dtype=jnp.float32)

    # Module init is gamma=ones, beta=zeros (identity); use non-trivial values
    # so the full kernel path is exercised.
    gamma = 1.0 + 0.5 * jax.random.normal(k2, (in_size,), dtype=jnp.float32)
    beta = jax.random.normal(k3, (in_size,), dtype=jnp.float32)

    out = jax.block_until_ready(supact(x, gamma, beta))
    ref = _supact_ref(x, gamma, beta)
    assert out.shape == x.shape and out.dtype == x.dtype
    assert jnp.allclose(out, ref, atol=1e-5, rtol=1e-5)

    # Identity at the module's default init (gamma=1, beta=0).
    g0 = jnp.ones((in_size,), dtype=jnp.float32)
    b0 = jnp.zeros((in_size,), dtype=jnp.float32)
    out0 = jax.block_until_ready(supact(x, g0, b0))
    assert jnp.allclose(out0, x, atol=1e-6, rtol=1e-6)

    # Multi-block gridded path (small block to force several pipelined steps).
    x_big = jax.random.normal(k4, (512, in_size), dtype=jnp.float32)
    out_big = jax.block_until_ready(supact(x_big, gamma, beta, block_rows=8))
    assert jnp.allclose(out_big, _supact_ref(x_big, gamma, beta), atol=1e-5, rtol=1e-5)

    # bf16 input: math in f32 inside the kernel, stored back as bf16.
    x_bf16 = x.astype(jnp.bfloat16)
    out_bf16 = jax.block_until_ready(supact(x_bf16, gamma, beta))
    assert out_bf16.dtype == jnp.bfloat16
    assert jnp.allclose(out_bf16.astype(jnp.float32),
                        _supact_ref(x_bf16, gamma, beta).astype(jnp.float32),
                        atol=5e-2, rtol=5e-2)

    print("KERNEL_OK")
</pallas_src>

<mosaic_0001>
module attributes {stable_mosaic.version = 11 : i64} {
  func.func @_supact_kernel(%arg0: i32, %arg1: memref<1x512xf32, #tpu.memory_space<vmem>>, %arg2: memref<1x512xf32, #tpu.memory_space<vmem>>, %arg3: memref<1x512xf32, #tpu.memory_space<vmem>>, %arg4: memref<1x512xf32, #tpu.memory_space<vmem>>) attributes {dimension_semantics = [#tpu.dimension_semantics<parallel>], iteration_bounds = array<i64: 1>, scalar_prefetch = 0 : i64, scratch_operands = 0 : i64, tpu.core_type = #tpu.core_type<tc>, window_params = [{pipeline_mode = #tpu.pipeline_mode<synchronous>, transform_indices = @transform_0, window_bounds = array<i64: 1, 512>}, {pipeline_mode = #tpu.pipeline_mode<synchronous>, transform_indices = @transform_1, window_bounds = array<i64: 1, 512>}, {transform_indices = @transform_2, window_bounds = array<i64: 1, 512>}, {transform_indices = @transform_3, window_bounds = array<i64: 1, 512>}]} {
    %c0 = arith.constant 0 : index
    %c0_0 = arith.constant 0 : index
    %0 = vector.load %arg3[%c0, %c0_0] : memref<1x512xf32, #tpu.memory_space<vmem>>, vector<1x512xf32>
    %c0_1 = arith.constant 0 : index
    %c0_2 = arith.constant 0 : index
    %1 = vector.load %arg1[%c0_1, %c0_2] : memref<1x512xf32, #tpu.memory_space<vmem>>, vector<1x512xf32>
    %c0_3 = arith.constant 0 : index
    %c0_4 = arith.constant 0 : index
    %2 = vector.load %arg2[%c0_3, %c0_4] : memref<1x512xf32, #tpu.memory_space<vmem>>, vector<1x512xf32>
    %3 = arith.mulf %2, %0 : vector<1x512xf32>
    %cst = arith.constant 0.000000e+00 : f32
    %4 = vector.broadcast %cst : f32 to vector<1x512xf32>
    %5 = arith.subf %4, %3 : vector<1x512xf32>
    %6 = math.exp %5 : vector<1x512xf32>
    %cst_5 = arith.constant 1.000000e+00 : f32
    %7 = vector.broadcast %cst_5 : f32 to vector<1x512xf32>
    %8 = arith.addf %7, %6 : vector<1x512xf32>
    %cst_6 = arith.constant 1.000000e+00 : f32
    %9 = vector.broadcast %cst_6 : f32 to vector<1x512xf32>
    %10 = arith.divf %9, %8 : vector<1x512xf32>
    %cst_7 = arith.constant 1.000000e+00 : f32
    %11 = vector.broadcast %cst_7 : f32 to vector<1x512xf32>
    %12 = arith.subf %11, %1 : vector<1x512xf32>
    %13 = arith.mulf %10, %12 : vector<1x512xf32>
    %14 = arith.addf %1, %13 : vector<1x512xf32>
    %15 = arith.mulf %14, %0 : vector<1x512xf32>
    %c0_8 = arith.constant 0 : index
    %c0_9 = arith.constant 0 : index
    %16 = vector.load %arg4[%c0_8, %c0_9] : memref<1x512xf32, #tpu.memory_space<vmem>>, vector<1x512xf32>
    tpu.vector_store %arg4[%c0_8, %c0_9], %15 {strides = array<i32>} : memref<1x512xf32, #tpu.memory_space<vmem>>, vector<1x512xf32>,
    return
  }
  func.func @transform_0(%arg0: i32) -> (i32, i32) {
    %c0_i32 = arith.constant 0 : i32
    %c0_i32_0 = arith.constant 0 : i32
    %c0_i32_1 = arith.constant 0 : i32
    return %c0_i32, %c0_i32_0 : i32, i32
  }
  func.func @transform_1(%arg0: i32) -> (i32, i32) {
    %c0_i32 = arith.constant 0 : i32
    %c0_i32_0 = arith.constant 0 : i32
    %c0_i32_1 = arith.constant 0 : i32
    return %c0_i32, %c0_i32_0 : i32, i32
  }
  func.func @transform_2(%arg0: i32) -> (i32, i32) {
    %c0_i32 = arith.constant 0 : i32
    %c0_i32_0 = arith.constant 0 : i32
    return %arg0, %c0_i32 : i32, i32
  }
  func.func @transform_3(%arg0: i32) -> (i32, i32) {
    %c0_i32 = arith.constant 0 : i32
    %c0_i32_0 = arith.constant 0 : i32
    return %arg0, %c0_i32 : i32, i32
  }
}

</mosaic_0001>

<bundles_post_ra>
// kernel: tpu_custom_call.1
= control target key start
LH: loop header
LB: loop body
LE: loop exit
PB: predicated region body
PF: predicated region fallthrough
CT: control target
= control target key end

     0   :  { %8 = vsyncpa [#allocation3], 0  ;;  %s252_s0 = inlined_call_operand.hbm [shape: f32[1,512], index: 0, kind: input, shape index: {}]   ;;  %s253_s1 = inlined_call_operand.hbm [shape: f32[1,512], index: 1, kind: input, shape index: {}]   ;;  %s254_s2 = inlined_call_operand.hbm [shape: f32[1,512], index: 2, kind: input, shape index: {}]   ;;  %s255_s3 = inlined_call_operand.hbm [shape: f32[1,512], index: 3, kind: output, shape index: {}]  }
   0x1   :  { %9 = vsyncpa [#allocation6], 0  ;;  %s27_s14 = sshll.u32 %s253_s1, 4  ;;  %s28_s14 = int_to_ptr.hbm [resolvable:$true] %s27_s14 }
   0x2   :  { %10 = vsyncpa [#allocation4], 0  ;;  %s216_s15 = smov [#allocation5]   ;;  %s16_s19 = sshll.u32 %s252_s0, 4  ;;  %s17_s19 = int_to_ptr.hbm [resolvable:$true] %s16_s19 }
   0x3   :  { %s29_s16 = sshll.u32 %s216_s15, 4  ;;  %s217_s20 = smov [#allocation2]   ;;  %s30_s16 = int_to_ptr.vmem [resolvable:$true] %s29_s16 }
   0x4   :  { %32 = dma.hbm_to_vmem [thread:$0]  %s28_s14, 64, %s30_s16, [#allocation6]  }
   0x5   :  { %s18_s21 = sshll.u32 %s217_s20, 4  ;;  %s38_s24 = sshll.u32 %s254_s2, 4  ;;  %s19_s21 = int_to_ptr.vmem [resolvable:$true] %s18_s21  ;;  %s39_s24 = int_to_ptr.hbm [resolvable:$true] %s38_s24 }
   0x6   :  { %21 = dma.hbm_to_vmem [thread:$0]  %s17_s19, 64, %s19_s21, [#allocation3]  }
   0x7   :  { %s218_s1 = smov [#allocation7]  }
   0x8   :  { %s40_s25 = sshll.u32 %s218_s1, 4  ;;  %s41_s25 = int_to_ptr.vmem [resolvable:$true] %s40_s25 }
   0x9   :  { %43 = dma.hbm_to_vmem [thread:$0]  %s39_s24, 64, %s41_s25, [#allocation6]  }
   0xa   :  { %210 = dma.done.wait [#allocation3], 64  }
   0xb   :  { %211 = vsyncadd [#allocation3], 4294967232 }
   0xc   :  { %212 = dma.done.wait [#allocation6], 128  }
   0xd   :  { %213 = vsyncadd [#allocation6], 4294967168  ;;  %v56_v0 = vld [vmem:[#allocation7] sm:$0xf]  ;;  %v58_v1 = vld [vmem:[#allocation5] sm:$0xf]  ;;  %v83_v19 = vlaneseq }
   0xe   :  { %v59_v2 = vmul.f32 %v58_v1, %v56_v0  ;;  %v57_v12 = vld [vmem:[#allocation2] sm:$0xf]  ;;  %s219_s0 = smov [#allocation8]   ;;  %s95_s28 = sshll.u32 %s255_s3, 4  ;;  %s96_s28 = int_to_ptr.hbm [resolvable:$true] %s95_s28 }
   0xf   :  { %v79_v16 = vsub.f32 1.0, %v57_v12  ;;  %s93_s2 = sshll.u32 %s219_s0, 4  ;;  %vm85_vm4 = vcmp.lt.s32.totalorder %v83_v19, 512  ;;  %s94_s2 = int_to_ptr.vmem [resolvable:$true] %s93_s2 }
  0x10   :  { %v60_v3 = vsub.f32 0.0, %v59_v2 }
  0x12   :  { %v61_v4 = vmul.f32 1.442695, %v60_v3 }
  0x14   :  { %110 = vpow2.f32 %v61_v4 }
  0x1a   :  { %v111_v5 = vpop.eup %110 }
  0x1b   :  { %v63_v6 = vadd.f32 1.0, %v111_v5 }
  0x1d   :  { %112 = vrcp.f32 %v63_v6  ;;  %v75_v9 = vand.u32 2147483648, %v63_v6  ;;  %vm69_vm0 = vweird.f32 %v63_v6  ;;  %v73_v11 = vand.u32 2147483647, %v63_v6 }
  0x1f   :  { %v76_v14 = vor.u32 1.1754944e-38, %v75_v9  ;;  %vm74_vm3 = vcmp.eq.f32.partialorder %v73_v11, 8.507059e+37 }
  0x23   :  { %v113_v7 = vpop.eup %112 }
  0x24   :  { %v65_v8 = vmul.f32 %v113_v7, %v63_v6  ;;  %vm70_vm1 = vweird.f32 %v113_v7 }
  0x25   :  { %vm71_vm2 = vmor %vm69_vm0, %vm70_vm1 }
  0x26   :  { %v66_v10 = vsub.f32 1.0, %v65_v8 }
  0x28   :  { %v67_v13 = vmul.f32 %v113_v7, %v66_v10 }
  0x2a   :  { %v68_v15 = vadd.f32 %v113_v7, %v67_v13 }
  0x2c   :  { %v72_v17 = vsel %vm71_vm2, %v113_v7, %v68_v15 }
  0x2d   :  { %v77_v18 = vsel %vm74_vm3, %v76_v14, %v72_v17 }
  0x2e   :  { %v80_v20 = vmul.f32 %v79_v16, %v77_v18 }
  0x30   :  { %v81_v21 = vadd.f32 %v80_v20, %v57_v12 }
  0x32   :  { %v82_v22 = vmul.f32 %v81_v21, %v56_v0 }
  0x34   :  { %87 = vst.msk [vmem:[#allocation8] sm:$0xf] %vm85_vm4, %v82_v22 }
  0x35   :  { %98 = dma.vmem_to_hbm [thread:$0]  %s94_s2, 64, %s96_s28, [#allocation4]  }
  0x36   :  { %214 = dma.done.wait [#allocation4], 64  }
  0x37   :  { %215 = vsyncadd [#allocation4], 4294967232 }
  0x38   :  { %103 = vsyncpa [#allocation3], 1 }
  0x39   :  { %104 = vsyncpa [#allocation6], 1 }
  0x3a   :  { %105 = vsyncpa [#allocation4], 1 }

</bundles_post_ra>
